<compile_context>
chip_gen: v6e
topology: v6e:2x2x1
jax: 0.10.0
libtpu: 0.0.40
codegen_flags: <defaults>
</compile_context>

<pallas_src>
import functools

import jax
import jax.numpy as jnp
from jax.experimental import pallas as pl
from jax.experimental.pallas import tpu as pltpu


def _round_up(x, m):
    return (x + m - 1) // m * m


def _wavenet_unit_kernel(
    xa_ref,       # (1, tT, C_res) f32   tap 0: x[t]
    xb_ref,       # (1, tT, C_res) f32   tap 1: x[t + d]
    w0_ref,       # (C_res, 2*C_res)     [wf0 | wg0]
    w1_ref,       # (C_res, 2*C_res)     [wf1 | wg1]
    bfg_ref,      # (1, 2*C_res) f32     [bf | bg]
    wout_ref,     # (C_res, C_pad)       [wr | ws | 0-pad]
    bout_ref,     # (1, C_pad) f32       [br | bs | 0-pad]
    y_ref,        # (1, tT, C_pad) f32   fused output slab
    *, c_res,
):
    xa = xa_ref[0]                      # (tT, C_res) f32
    xb = xb_ref[0]                      # (tT, C_res) f32
    mm = w0_ref.dtype                   # matmul operand dtype (f32 or bf16)

    # Fused filter+gate pre-activation: two wide MXU matmuls instead of four.
    pre = (
        jnp.dot(xa.astype(mm), w0_ref[...], preferred_element_type=jnp.float32)
        + jnp.dot(xb.astype(mm), w1_ref[...], preferred_element_type=jnp.float32)
        + bfg_ref[...]
    )                                   # (tT, 2*C_res) f32
    z = jnp.tanh(pre[:, :c_res]) * jax.nn.sigmoid(pre[:, c_res:])  # (tT, C_res) f32

    # Fused res+skip 1x1 convs: one MXU matmul into a lane-dense slab.
    y = (
        jnp.dot(z.astype(mm), wout_ref[...], preferred_element_type=jnp.float32)
        + bout_ref[...]
    )                                   # (tT, C_pad) f32

    # Residual add on the first C_res lanes (pad xb with zeros to slab width so
    # the store stays a full-width unmasked vector store).
    c_pad = y_ref.shape[2]
    if c_pad > c_res:
        xb_res = jnp.concatenate(
            [xb, jnp.zeros((xb.shape[0], c_pad - c_res), xb.dtype)], axis=1
        )
    else:
        xb_res = xb
    y_ref[0] = (y + xb_res).astype(y_ref.dtype)


@functools.partial(
    jax.jit,
    static_argnames=("dilation", "skip_offset", "matmul_dtype", "time_tile"),
)
def wavenet_unit(x_nct, params, dilation, skip_offset,
                 matmul_dtype=jnp.float32, time_tile=1024):
    """x_nct: (B, C_res, T) float32. Returns (x_res, x_skip) in NCW like PyTorch."""
    B, C_res, T = x_nct.shape
    T_out = T - dilation
    C_skip = params["ws"].shape[1]
    C_out = C_res + C_skip
    C_pad = _round_up(C_out, 128)       # lane-dense fused output width

    # (B, T, C): channels on lanes, time on sublanes.
    x_btc = jnp.transpose(x_nct, (0, 2, 1))

    # Time tiling: tT multiple of 8, padded T_out to a whole number of tiles.
    tT = min(int(time_tile), _round_up(T_out, 8))
    T_pad = _round_up(T_out, tT)
    n_t = T_pad // tT

    def prep_tap(start):
        tap = jax.lax.slice_in_dim(x_btc, start, start + T_out, axis=1)
        return jnp.pad(tap, ((0, 0), (0, T_pad - T_out), (0, 0)))

    xa = prep_tap(0)            # x[t]     -> (B, T_pad, C_res)
    xb = prep_tap(dilation)     # x[t + d] -> (B, T_pad, C_res)

    # Fused weights / biases (built once in the wrapper).
    w0 = jnp.concatenate([params["wf0"], params["wg0"]], axis=1).astype(matmul_dtype)
    w1 = jnp.concatenate([params["wf1"], params["wg1"]], axis=1).astype(matmul_dtype)
    bfg = jnp.concatenate([params["bf"], params["bg"]], axis=1).astype(jnp.float32)
    wout = jnp.concatenate([params["wr"], params["ws"]], axis=1)
    wout = jnp.pad(wout, ((0, 0), (0, C_pad - C_out))).astype(matmul_dtype)
    bout = jnp.concatenate([params["br"], params["bs"]], axis=1)
    bout = jnp.pad(bout, ((0, 0), (0, C_pad - C_out))).astype(jnp.float32)

    kernel = functools.partial(_wavenet_unit_kernel, c_res=C_res)

    def wspec(arr):
        # Constant block index on both grid axes -> weights stay VMEM-resident.
        return pl.BlockSpec(arr.shape, lambda b, t, _n=arr.ndim: (0,) * _n)

    y = pl.pallas_call(
        kernel,
        out_shape=jax.ShapeDtypeStruct((B, T_pad, C_pad), jnp.float32),
        grid=(B, n_t),
        in_specs=[
            pl.BlockSpec((1, tT, C_res), lambda b, t: (b, t, 0)),   # tap 0
            pl.BlockSpec((1, tT, C_res), lambda b, t: (b, t, 0)),   # tap 1
            wspec(w0), wspec(w1), wspec(bfg), wspec(wout), wspec(bout),
        ],
        out_specs=pl.BlockSpec((1, tT, C_pad), lambda b, t: (b, t, 0)),
        compiler_params=pltpu.CompilerParams(
            dimension_semantics=("parallel", "parallel"),
            vmem_limit_bytes=48 * 1024 * 1024,   # sized to fit v7x (64 MiB VMEM)
        ),
    )(xa, xb, w0, w1, bfg, wout, bout)

    # Glue: split the fused slab, drop time/channel padding, apply skipOffset,
    # and transpose back to the PyTorch NCW convention.
    res = y[:, :T_out, :C_res]
    skip = y[:, skip_offset - 1:T_out, C_res:C_out]
    x_res = jnp.transpose(res, (0, 2, 1))     # (B, C_res, T_out)
    x_skip = jnp.transpose(skip, (0, 2, 1))   # (B, C_skip, T_out - skip_offset + 1)
    return x_res, x_skip


def init_params(key, n_res, n_skip):
    """Deterministic synthetic params. Conv1d weights (out,in,k) stored as
    per-tap (in,out) matmul matrices; biases as (1,out) rows."""
    ks = jax.random.split(key, 8)
    s = 0.3
    return {
        "wf0": s * jax.random.normal(ks[0], (n_res, n_res), jnp.float32),
        "wf1": s * jax.random.normal(ks[1], (n_res, n_res), jnp.float32),
        "bf": s * jax.random.normal(ks[2], (1, n_res), jnp.float32),
        "wg0": s * jax.random.normal(ks[3], (n_res, n_res), jnp.float32),
        "wg1": s * jax.random.normal(ks[4], (n_res, n_res), jnp.float32),
        "bg": s * jax.random.normal(ks[5], (1, n_res), jnp.float32),
        "wr": s * jax.random.normal(ks[6], (n_res, n_res), jnp.float32),
        "br": jnp.zeros((1, n_res), jnp.float32),
        "ws": s * jax.random.normal(ks[7], (n_res, n_skip), jnp.float32),
        "bs": jnp.zeros((1, n_skip), jnp.float32),
    }


def reference(x_nct, params, dilation, skip_offset):
    """Plain-JAX reference mirroring the PyTorch forward (NCW)."""
    x_btc = jnp.transpose(x_nct, (0, 2, 1))        # (B, T, C)
    T = x_btc.shape[1]
    T_out = T - dilation
    xa = x_btc[:, :T_out, :]
    xb = x_btc[:, dilation:, :]
    f = jnp.tanh(xa @ params["wf0"] + xb @ params["wf1"] + params["bf"])
    g = jax.nn.sigmoid(xa @ params["wg0"] + xb @ params["wg1"] + params["bg"])
    z = f * g
    res = z @ params["wr"] + params["br"] + xb
    skip = (z @ params["ws"] + params["bs"])[:, skip_offset - 1:, :]
    return jnp.transpose(res, (0, 2, 1)), jnp.transpose(skip, (0, 2, 1))


if __name__ == "__main__":
    B, C_RES, C_SKIP, T = 2, 8, 16, 16
    DILATION = 2
    SKIP_OFFSET = 3

    key = jax.random.PRNGKey(0)
    kx, kp = jax.random.split(key)
    x = jax.random.normal(kx, (B, C_RES, T), jnp.float32)
    params = init_params(kp, C_RES, C_SKIP)

    r_res, r_skip = reference(x, params, DILATION, SKIP_OFFSET)

    # f32 path (matches PyTorch numerics).
    x_res, x_skip = wavenet_unit(x, params, DILATION, SKIP_OFFSET)
    jax.block_until_ready((x_res, x_skip))
    assert x_res.shape == (B, C_RES, T - DILATION)
    assert x_skip.shape == (B, C_SKIP, T - DILATION - (SKIP_OFFSET - 1))
    assert jnp.allclose(x_res, r_res, atol=1e-4, rtol=1e-4)
    assert jnp.allclose(x_skip, r_skip, atol=1e-4, rtol=1e-4)

    # bf16-operand MXU path (perf mode on v5e/v6e/v7x): looser tolerance.
    b_res, b_skip = wavenet_unit(
        x, params, DILATION, SKIP_OFFSET, matmul_dtype=jnp.bfloat16
    )
    jax.block_until_ready((b_res, b_skip))
    assert jnp.allclose(b_res, r_res, atol=5e-2, rtol=5e-2)
    assert jnp.allclose(b_skip, r_skip, atol=5e-2, rtol=5e-2)

    print("KERNEL_OK")
</pallas_src>

<mosaic_0001>
module attributes {stable_mosaic.version = 11 : i64} {
  func.func @_wavenet_unit_kernel(%arg0: i32, %arg1: i32, %arg2: memref<1x16x8xf32, #tpu.memory_space<vmem>>, %arg3: memref<1x16x8xf32, #tpu.memory_space<vmem>>, %arg4: memref<8x16xf32, #tpu.memory_space<vmem>>, %arg5: memref<8x16xf32, #tpu.memory_space<vmem>>, %arg6: memref<1x16xf32, #tpu.memory_space<vmem>>, %arg7: memref<8x128xf32, #tpu.memory_space<vmem>>, %arg8: memref<1x128xf32, #tpu.memory_space<vmem>>, %arg9: memref<1x16x128xf32, #tpu.memory_space<vmem>>) attributes {dimension_semantics = [#tpu.dimension_semantics<parallel>, #tpu.dimension_semantics<parallel>], iteration_bounds = array<i64: 2, 1>, scalar_prefetch = 0 : i64, scratch_operands = 0 : i64, tpu.core_type = #tpu.core_type<tc>, window_params = [{transform_indices = @transform_0, window_bounds = array<i64: 1, 16, 8>}, {transform_indices = @transform_1, window_bounds = array<i64: 1, 16, 8>}, {pipeline_mode = #tpu.pipeline_mode<synchronous>, transform_indices = @transform_2, window_bounds = array<i64: 8, 16>}, {pipeline_mode = #tpu.pipeline_mode<synchronous>, transform_indices = @transform_3, window_bounds = array<i64: 8, 16>}, {pipeline_mode = #tpu.pipeline_mode<synchronous>, transform_indices = @transform_4, window_bounds = array<i64: 1, 16>}, {pipeline_mode = #tpu.pipeline_mode<synchronous>, transform_indices = @transform_5, window_bounds = array<i64: 8, 128>}, {pipeline_mode = #tpu.pipeline_mode<synchronous>, transform_indices = @transform_6, window_bounds = array<i64: 1, 128>}, {transform_indices = @transform_7, window_bounds = array<i64: 1, 16, 128>}]} {
    %c0 = arith.constant 0 : index
    %c0_0 = arith.constant 0 : index
    %c0_1 = arith.constant 0 : index
    %0 = vector.load %arg2[%c0, %c0_0, %c0_1] : memref<1x16x8xf32, #tpu.memory_space<vmem>>, vector<1x16x8xf32>
    %1 = vector.shape_cast %0 : vector<1x16x8xf32> to vector<16x8xf32>
    %c0_2 = arith.constant 0 : index
    %c0_3 = arith.constant 0 : index
    %c0_4 = arith.constant 0 : index
    %2 = vector.load %arg3[%c0_2, %c0_3, %c0_4] : memref<1x16x8xf32, #tpu.memory_space<vmem>>, vector<1x16x8xf32>
    %3 = vector.shape_cast %2 : vector<1x16x8xf32> to vector<16x8xf32>
    %c0_5 = arith.constant 0 : index
    %c0_6 = arith.constant 0 : index
    %4 = vector.load %arg4[%c0_5, %c0_6] : memref<8x16xf32, #tpu.memory_space<vmem>>, vector<8x16xf32>
    %cst = arith.constant dense<0.000000e+00> : vector<16x16xf32>
    %5 = tpu.matmul %1, %4, %cst {dimension_numbers = #tpu.dot_dimension_numbers<[1], [0], [0], [1], [0, 0, 1, 1], [], []>} : vector<16x8xf32>, vector<8x16xf32>, vector<16x16xf32> -> vector<16x16xf32>
    %c0_7 = arith.constant 0 : index
    %c0_8 = arith.constant 0 : index
    %6 = vector.load %arg5[%c0_7, %c0_8] : memref<8x16xf32, #tpu.memory_space<vmem>>, vector<8x16xf32>
    %cst_9 = arith.constant dense<0.000000e+00> : vector<16x16xf32>
    %7 = tpu.matmul %3, %6, %cst_9 {dimension_numbers = #tpu.dot_dimension_numbers<[1], [0], [0], [1], [0, 0, 1, 1], [], []>} : vector<16x8xf32>, vector<8x16xf32>, vector<16x16xf32> -> vector<16x16xf32>
    %8 = arith.addf %5, %7 : vector<16x16xf32>
    %c0_10 = arith.constant 0 : index
    %c0_11 = arith.constant 0 : index
    %9 = vector.load %arg6[%c0_10, %c0_11] : memref<1x16xf32, #tpu.memory_space<vmem>>, vector<1x16xf32>
    %10 = vector.broadcast %9 : vector<1x16xf32> to vector<16x16xf32>
    %11 = arith.addf %8, %10 : vector<16x16xf32>
    %12 = vector.extract_strided_slice %11 {offsets = [0, 0], sizes = [16, 8], strides = [1, 1]} : vector<16x16xf32> to vector<16x8xf32>
    %13 = math.tanh %12 : vector<16x8xf32>
    %14 = vector.extract_strided_slice %11 {offsets = [0, 8], sizes = [16, 8], strides = [1, 1]} : vector<16x16xf32> to vector<16x8xf32>
    %15 = arith.negf %14 : vector<16x8xf32>
    %16 = math.exp %15 : vector<16x8xf32>
    %cst_12 = arith.constant 1.000000e+00 : f32
    %17 = vector.broadcast %cst_12 : f32 to vector<16x8xf32>
    %18 = arith.addf %17, %16 : vector<16x8xf32>
    %19 = arith.divf %17, %18 : vector<16x8xf32>
    %20 = arith.mulf %13, %19 : vector<16x8xf32>
    %c0_13 = arith.constant 0 : index
    %c0_14 = arith.constant 0 : index
    %21 = vector.load %arg7[%c0_13, %c0_14] : memref<8x128xf32, #tpu.memory_space<vmem>>, vector<8x128xf32>
    %cst_15 = arith.constant dense<0.000000e+00> : vector<16x128xf32>
    %22 = tpu.matmul %20, %21, %cst_15 {dimension_numbers = #tpu.dot_dimension_numbers<[1], [0], [0], [1], [0, 0, 1, 1], [], []>} : vector<16x8xf32>, vector<8x128xf32>, vector<16x128xf32> -> vector<16x128xf32>
    %c0_16 = arith.constant 0 : index
    %c0_17 = arith.constant 0 : index
    %23 = vector.load %arg8[%c0_16, %c0_17] : memref<1x128xf32, #tpu.memory_space<vmem>>, vector<1x128xf32>
    %24 = vector.broadcast %23 : vector<1x128xf32> to vector<16x128xf32>
    %25 = arith.addf %22, %24 : vector<16x128xf32>
    %cst_18 = arith.constant 0.000000e+00 : f32
    %26 = vector.broadcast %cst_18 : f32 to vector<16x120xf32>
    %27 = tpu.concatenate %3, %26 in 1 : vector<16x8xf32>, vector<16x120xf32> -> vector<16x128xf32>
    %28 = arith.addf %25, %27 : vector<16x128xf32>
    %c0_19 = arith.constant 0 : index
    %c0_20 = arith.constant 0 : index
    %c0_21 = arith.constant 0 : index
    %29 = vector.load %arg9[%c0_19, %c0_20, %c0_21] : memref<1x16x128xf32, #tpu.memory_space<vmem>>, vector<1x16x128xf32>
    %30 = vector.shape_cast %29 : vector<1x16x128xf32> to vector<16x128xf32>
    %31 = vector.shape_cast %28 : vector<16x128xf32> to vector<1x16x128xf32>
    tpu.vector_store %arg9[%c0_19, %c0_20, %c0_21], %31 {strides = array<i32>} : memref<1x16x128xf32, #tpu.memory_space<vmem>>, vector<1x16x128xf32>,
    return
  }
  func.func @transform_0(%arg0: i32, %arg1: i32) -> (i32, i32, i32) {
    %c0_i32 = arith.constant 0 : i32
    %c0_i32_0 = arith.constant 0 : i32
    return %arg0, %arg1, %c0_i32 : i32, i32, i32
  }
  func.func @transform_1(%arg0: i32, %arg1: i32) -> (i32, i32, i32) {
    %c0_i32 = arith.constant 0 : i32
    %c0_i32_0 = arith.constant 0 : i32
    return %arg0, %arg1, %c0_i32 : i32, i32, i32
  }
  func.func @transform_2(%arg0: i32, %arg1: i32) -> (i32, i32) {
    %c0_i32 = arith.constant 0 : i32
    %c0_i32_0 = arith.constant 0 : i32
    %c0_i32_1 = arith.constant 0 : i32
    return %c0_i32, %c0_i32_0 : i32, i32
  }
  func.func @transform_3(%arg0: i32, %arg1: i32) -> (i32, i32) {
    %c0_i32 = arith.constant 0 : i32
    %c0_i32_0 = arith.constant 0 : i32
    %c0_i32_1 = arith.constant 0 : i32
    return %c0_i32, %c0_i32_0 : i32, i32
  }
  func.func @transform_4(%arg0: i32, %arg1: i32) -> (i32, i32) {
    %c0_i32 = arith.constant 0 : i32
    %c0_i32_0 = arith.constant 0 : i32
    %c0_i32_1 = arith.constant 0 : i32
    return %c0_i32, %c0_i32_0 : i32, i32
  }
  func.func @transform_5(%arg0: i32, %arg1: i32) -> (i32, i32) {
    %c0_i32 = arith.constant 0 : i32
    %c0_i32_0 = arith.constant 0 : i32
    %c0_i32_1 = arith.constant 0 : i32
    return %c0_i32, %c0_i32_0 : i32, i32
  }
  func.func @transform_6(%arg0: i32, %arg1: i32) -> (i32, i32) {
    %c0_i32 = arith.constant 0 : i32
    %c0_i32_0 = arith.constant 0 : i32
    %c0_i32_1 = arith.constant 0 : i32
    return %c0_i32, %c0_i32_0 : i32, i32
  }
  func.func @transform_7(%arg0: i32, %arg1: i32) -> (i32, i32, i32) {
    %c0_i32 = arith.constant 0 : i32
    %c0_i32_0 = arith.constant 0 : i32
    return %arg0, %arg1, %c0_i32 : i32, i32, i32
  }
}

</mosaic_0001>

<bundles_post_ra>
// kernel: wavenet_unit.1
= control target key start
LH: loop header
LB: loop body
LE: loop exit
PB: predicated region body
PF: predicated region fallthrough
CT: control target
= control target key end

     0   :  { %s908_s24 = smov 0   ;;  %s910_s25 = smov 0   ;;  %s972_s0 = inlined_call_operand.vmem [shape: f32[2,16,8], index: 0, kind: input, shape index: {}]   ;;  %s973_s1 = inlined_call_operand.vmem [shape: f32[2,16,8], index: 1, kind: input, shape index: {}]   ;;  %s974_s2 = inlined_call_operand.vmem [shape: f32[8,16], index: 2, kind: input, shape index: {}]   ;;  %s975_s3 = inlined_call_operand.vmem [shape: f32[8,16], index: 3, kind: input, shape index: {}]   ;;  %s976_s4 = inlined_call_operand.vmem [shape: f32[1,16], index: 4, kind: input, shape index: {}]   ;;  %s977_s5 = inlined_call_operand.vmem [shape: f32[8,128], index: 5, kind: input, shape index: {}]   ;;  %s978_s6 = inlined_call_operand.vmem [shape: f32[1,128], index: 6, kind: input, shape index: {}]   ;;  %s979_s7 = inlined_call_operand.vmem [shape: f32[2,16,128], index: 7, kind: output, shape index: {}]  }
   0x1   :  { %s912_s26 = smov 0  }
   0x2 LB: > { %s29_s27 = sadd.s32 1, %s861_s25  ;;  %p760_p0 = scmp.ge.s32.totalorder %s865_s26, 1  ;;  %s865_s26 = sphi %s912_s26, %s17_s26   ;;  %s861_s25 = sphi %s910_s25, %s981_s25   ;;  %s857_s24 = sphi %s908_s24, %s980_s24  }
   0x3   : > { %p31_p1 = scmp.ge.s32.totalorder %s29_s27, 2  ;;  %p275_p2 = scmp.lt.s32.totalorder %s865_s26, 3 }
   0x5   : > { %s983_s27 = smov (%p31_p1, %s29_s27), 0  ;;  %p276_p3 = pnand %p760_p0, %p275_p2 }
   0x6   : > { %p325_p4 = scmp.lt.s32.totalorder (!%p276_p3), %s857_s24, 1  ;;  %s867_s20 = smov (!%p276_p3), 120  }
   0x7   : > { %279 = sbr.rel (%p276_p3) target bundleno = 570 (0x23a), region = 48 }
   0xc   : > { %v359_v0 = vld [vmem:[%s975_s3] sm:$0xff]  ;;  %s985_s24 = smov (!%p325_p4, %s857_s24), 1  ;;  %vm360_vm0 = vcmask 64512  }
   0xd   : > { %v358_v1 = vld [vmem:[%s974_s2] sm:$0xff]  ;;  %791 = vmatprep.subr.mxu0 %v359_v0  ;;  %s932_s9 = sshll.u32 %s985_s24, 4 }
   0xe   : > { %796 = vmatprep.subr.mxu1 %v358_v1  ;;  %792 = vmatpush3.msra.mxu0 %v359_v0  ;;  %s342_s12 = scalar_lea.vmem %s973_s1, %s932_s9  ;;  %s332_s15 = scalar_lea.vmem %s972_s0, %s932_s9  ;;  %v771_v8 = vld [vmem:[%s976_s4] ss:$0 sm:$0xff] }
   0xf   : > { %797 = vmatpush3.msra.mxu1 %v358_v1  ;;  %v356_v2 = vld [vmem:[%s342_s12] sm:$0xff]  ;;  %v357_v3 = vld [vmem:[%s342_s12 + $0x8] sm:$0xff]  ;;  %s352_s28 = scalar_lea.vmem %s979_s7, %s932_s9 }
  0x10   : > { %v354_v4 = vld [vmem:[%s332_s15] sm:$0xff]  ;;  %793 = vmatprep.mubr.msk.f32.mxu0 %vm360_vm0, %v356_v2  ;;  %v355_v5 = vld [vmem:[%s332_s15 + $0x8] sm:$0xff]  ;;  %v646_v32 = vsel %vm360_vm0, %v357_v3, 0.0  ;;  %v645_v34 = vsel %vm360_vm0, %v356_v2, 0.0 }
  0x11   : > { %798 = vmatprep.mubr.msk.f32.mxu1 %vm360_vm0, %v354_v4  ;;  %794 = vmatmul.mubr.msk.f32.vlgmr.msra.gmra.mxu0 %vm360_vm0, %v357_v3  ;;  %v556_v21 = vld [vmem:[%s977_s5] sm:$0xff] }
  0x12   : > { %799 = vmatmul.mubr.msk.f32.vlgmr.msra.gmra.mxu1 %vm360_vm0, %v355_v5  ;;  %801 = vmatprep.subr.mxu0 %v556_v21  ;;  %v774_v30 = vld [vmem:[%s978_s6] ss:$0 sm:$0xff] }
  0x13   : > { %802 = vmatpush3.msra.mxu0 %v556_v21 }
  0xd1   : > { %v795_v6 = vpop.f32.mrf.mxu0 }
  0xd2   : > { %v800_v7 = vpop.f32.mrf.mxu1 }
  0xd3   : > { %v520_v9 = vadd.f32 %v800_v7, %v795_v6  ;;  %v433_v10 = vpop.f32.mrf.mxu0 }
  0xd4   : > { %v514_v11 = vpop.f32.mrf.mxu1 }
  0xd5   : > { %v531_v12 = vadd.f32 %v771_v8, %v520_v9  ;;  %v515_v13 = vadd.f32 %v514_v11, %v433_v10 }
  0xd7   : > { %v773_v14 = vmul.f32 -1.442695, %v531_v12  ;;  %v530_v15 = vadd.f32 %v771_v8, %v515_v13 }
  0xd9   : > { %v772_v16 = vmul.f32 -1.442695, %v530_v15  ;;  %831 = vpow2.f32 %v773_v14 }
  0xdb   : > { %833 = vpow2.f32 %v772_v16 }
  0xe6   : > { %v832_v17 = vpop.eup %831 }
  0xe7   : > { %v541_v20 = vadd.f32 1.0, %v832_v17 }
  0xe8   : > { %v834_v18 = vpop.eup %833 }
  0xe9   : > { %v540_v19 = vadd.f32 1.0, %v834_v18 }
  0xeb   : > { %835 = vrcp.f32 %v540_v19 }
  0xec   : > { %837 = vrcp.f32 %v541_v20 }
  0xed   : > { %839 = vtanh.f32 %v530_v15 }
  0xee   : > { %841 = vtanh.f32 %v531_v12 }
  0xf8   : > { %v836_v22 = vpop.eup %835 }
  0xf9   : > { %548 = vrot.lane.b32.xlu0 %v836_v22, %s867_s20  ;;  %v838_v23 = vpop.eup %837 }
  0xfa   : > { %v840_v24 = vpop.eup %839 }
  0xfb   : > { %v842_v27 = vpop.eup %841 }
  0xfd   : > { %550 = vrot.lane.b32.xlu0 %v838_v23, %s867_s20 }
 0x16b   : > { %v549_v25 = vpop.permute.xlu0 %548 }
 0x16c   : > { %v554_v26 = vmul.f32 %v840_v24, %v549_v25 }
 0x16e   : > { %803 = vmatprep.mubr.msk.f32.mxu0 %vm360_vm0, %v554_v26 }
 0x16f   : > { %v551_v28 = vpop.permute.xlu0 %550 }
 0x170   : > { %v555_v29 = vmul.f32 %v842_v27, %v551_v28 }
 0x172   : > { %804 = vmatmul.mubr.msk.f32.vlgmr.msra.gmra.mxu0 %vm360_vm0, %v555_v29 }
 0x232   : > { %v805_v31 = vpop.f32.mrf.mxu0 }
 0x233   : > { %v642_v33 = vadd.f32 %v805_v31, %v774_v30 }
 0x234   : > { %v636_v35 = vpop.f32.mrf.mxu0 }
 0x235   : > { %v648_v36 = vadd.f32 %v646_v32, %v642_v33  ;;  %v637_v37 = vadd.f32 %v774_v30, %v636_v35 }
 0x237   : > { %650 = vst [vmem:[%s352_s28 + $0x8] sm:$0xff] %v648_v36  ;;  %v647_v38 = vadd.f32 %v645_v34, %v637_v37 }
 0x239   : > { %649 = vst [vmem:[%s352_s28] sm:$0xff] %v647_v38 }
 0x23a PF: > { %s17_s26 = sadd.s32 1, %s865_s26   ;;  %s980_s24 = smov %s861_s25 }
 0x23b   : > { %p14_p5 = scmp.ge.s32.totalorder %s17_s26, 4   ;;  %s981_s25 = smov %s983_s27 }
 0x23d   :  { %16 = sbr.rel (!%p14_p5) target bundleno = 2 (0x2), region = 81 }

</bundles_post_ra>
